<compile_context>
chip_gen: v5e
topology: v5e:2x2
jax: 0.10.0
libtpu: 0.0.40
codegen_flags: <defaults>
</compile_context>

<pallas_src>
import functools

import jax
import jax.numpy as jnp
import numpy as np
from jax.experimental import pallas as pl
from jax.experimental.pallas import tpu as pltpu


def _round_up(x, m):
    return (x + m - 1) // m * m


def _tpu_generation():
    """Best-effort TPU generation detection (used only for static tile sizing)."""
    try:
        kind = jax.devices()[0].device_kind.lower()
    except Exception:  # pragma: no cover
        return "unknown"
    if "v5 lite" in kind or "v5e" in kind or "v5litepod" in kind:
        return "v5e"
    if "v6" in kind or "trillium" in kind:
        return "v6e"
    if "v7" in kind:
        return "v7x"
    return "unknown"


def _tile_config(rows, Kp, Coutp, block_rows):
    """Pick row-tile size TM and VMEM limit per TPU generation.

    The budget includes the resident (Kp, Coutp) bf16 weight block (counted at
    two buffers -- its index_map is constant, so pipeline_mode=pl.Buffered(1)
    could drop one copy; we stay conservative) plus the psum/psumsq and
    scale/shift tiles, plus the double-buffered per-row tiles of both passes.
    """
    gen = _tpu_generation()
    if gen == "v7x":      # 64 MiB physical VMEM, 2 TensorCores/chip
        vmem_limit, tm_target, align, min_tiles = 48 << 20, 1024, 256, 2
    elif gen == "v6e":    # 128 MiB physical VMEM
        vmem_limit, tm_target, align, min_tiles = 64 << 20, 1024, 256, 1
    elif gen == "v5e":    # 128 MiB physical, most HBM-starved -> big tiles
        vmem_limit, tm_target, align, min_tiles = 64 << 20, 1024, 128, 1
    else:
        vmem_limit, tm_target, align, min_tiles = 32 << 20, 512, 128, 1

    budget = int(vmem_limit * 0.75)             # headroom for compiler scratch
    fixed = (2 * Kp * Coutp * 2                 # weight block (bf16), 2 buffers
             + 2 * 2 * Coutp * 4 * 2            # psum + psumsq tiles, 2 buffers
             + 2 * 2 * Coutp * 4)               # scale + shift tiles, 2 buffers
    per_row = max(
        2 * (Kp * 2 + Coutp * 2),               # pass 1: xcol bf16 in + conv bf16 out
        2 * (Coutp * 2 + Coutp * 4))            # pass 2: conv bf16 in + f32 out
    avail = max(budget - fixed, 2 << 20)
    tm_cap = max(align, (avail // per_row) // align * align)

    TM = min(tm_target, tm_cap, _round_up(rows, align))
    if min_tiles > 1 and rows > align:
        # Keep at least `min_tiles` grid steps so every TensorCore gets work.
        TM = min(TM, max(align, _round_up(-(-rows // min_tiles), align)))
    if block_rows is not None:
        TM = min(TM, max(8, _round_up(block_rows, 8)))
    TM = max(8, TM)
    rows_p = _round_up(rows, TM)
    return TM, rows_p, rows_p // TM, vmem_limit


def _conv_stats_kernel(xcol_ref, w_ref, conv_ref, psum_ref, psumsq_ref):
    """Pass 1: one MXU contraction per row tile + per-tile BN partial stats.

    xcol_ref:   (TM, Kp)       im2col rows (bf16)
    w_ref:      (Kp, Coutp)    flattened HWIO weights (bf16, VMEM-resident)
    conv_ref:   (TM, Coutp)    bf16 conv output tile (lane-dense)
    psum_ref:   (1, 1, Coutp)  per-tile f32 sum over rows
    psumsq_ref: (1, 1, Coutp)  per-tile f32 sum of squares over rows
    """
    y = jnp.dot(xcol_ref[...], w_ref[...], preferred_element_type=jnp.float32)
    conv_ref[...] = y.astype(conv_ref.dtype)
    psum_ref[...] = jnp.sum(y, axis=0, keepdims=True).reshape(1, 1, -1)
    psumsq_ref[...] = jnp.sum(y * y, axis=0, keepdims=True).reshape(1, 1, -1)


def _bn_relu_kernel(conv_ref, scale_ref, shift_ref, o_ref):
    """Pass 2: pure multiply-add-ReLU stream with precomputed scale/shift."""
    y = conv_ref[...].astype(jnp.float32) * scale_ref[...] + shift_ref[...]
    o_ref[...] = jnp.maximum(y, 0.0).astype(o_ref.dtype)


@functools.partial(
    jax.jit,
    static_argnames=("stride", "padding", "eps", "block_rows", "mxu_dtype"))
def conv_bn_relu(x_nchw, weight_oihw, gamma, beta, *, stride=1, padding=None,
                 eps=1e-5, block_rows=None, mxu_dtype=jnp.bfloat16):
    """NCHW in / NCHW out, matching the PyTorch module's forward (training-mode BN).

    `padding=None` follows the module's own heuristic:
    (kernel_size - 1) // 2 when stride == 1, else 0.
    """
    N, Cin, H, W = x_nchw.shape
    Cout, Cin_w, KH, KW = weight_oihw.shape
    assert Cin == Cin_w, "groups != 1 not supported"  # TODO(synk): groups > 1
    if padding is None:
        padding = (KH - 1) // 2 if stride == 1 else 0

    Ho = (H + 2 * padding - KH) // stride + 1
    Wo = (W + 2 * padding - KW) // stride + 1
    rows = N * Ho * Wo
    K = KH * KW * Cin
    Kp = _round_up(K, 128)        # lane-dense contraction dim
    Coutp = _round_up(Cout, 128)  # lane-dense output channels
    TM, rows_p, T, vmem_limit = _tile_config(rows, Kp, Coutp, block_rows)

    # ---- wrapper-side layout plumbing, done directly in the MXU dtype ----
    x_nhwc = jnp.transpose(x_nchw, (0, 2, 3, 1)).astype(mxu_dtype)
    x_pad = jnp.pad(
        x_nhwc, ((0, 0), (padding, padding), (padding, padding), (0, 0)))
    taps = []
    for kh in range(KH):
        for kw in range(KW):
            taps.append(x_pad[:, kh:kh + (Ho - 1) * stride + 1:stride,
                              kw:kw + (Wo - 1) * stride + 1:stride, :])
    xcol = jnp.concatenate(taps, axis=-1).reshape(rows, K)
    xcol = jnp.pad(xcol, ((0, rows_p - rows), (0, Kp - K)))

    w2d = jnp.transpose(weight_oihw, (2, 3, 1, 0)).reshape(K, Cout)
    w2d = jnp.pad(w2d.astype(jnp.float32),
                  ((0, Kp - K), (0, Coutp - Cout))).astype(mxu_dtype)
    gamma_p = jnp.pad(gamma.astype(jnp.float32).reshape(1, Cout),
                      ((0, 0), (0, Coutp - Cout)), constant_values=1.0)
    beta_p = jnp.pad(beta.astype(jnp.float32).reshape(1, Cout),
                     ((0, 0), (0, Coutp - Cout)))

    cparams = pltpu.CompilerParams(
        dimension_semantics=("parallel",), vmem_limit_bytes=vmem_limit)

    # ---- pass 1: conv (one MXU contraction per row tile) + BN partials ----
    conv_out, psum, psumsq = pl.pallas_call(
        _conv_stats_kernel,
        out_shape=(
            jax.ShapeDtypeStruct((rows_p, Coutp), mxu_dtype),   # bf16 intermediate
            jax.ShapeDtypeStruct((T, 1, Coutp), jnp.float32),
            jax.ShapeDtypeStruct((T, 1, Coutp), jnp.float32),
        ),
        grid=(T,),
        in_specs=[
            pl.BlockSpec((TM, Kp), lambda i: (i, 0)),
            # Constant index_map -> weights stay VMEM-resident; the VMEM budget
            # conservatively accounts for two buffer copies.
            pl.BlockSpec((Kp, Coutp), lambda i: (0, 0)),
        ],
        out_specs=(
            pl.BlockSpec((TM, Coutp), lambda i: (i, 0)),
            pl.BlockSpec((1, 1, Coutp), lambda i: (i, 0, 0)),
            pl.BlockSpec((1, 1, Coutp), lambda i: (i, 0, 0)),
        ),
        compiler_params=cparams,
    )(xcol, w2d)

    # ---- finalize BN batch stats once (tiny) -> per-channel scale / shift ----
    # TODO(synk): E[x^2]-E[x]^2 in f32 is cancellation-prone for very large
    # rows with |mean| >> std; a Welford-style per-tile merge would be safer.
    inv_n = 1.0 / float(rows)     # zero-padded rows contribute 0 to both sums
    s = jnp.sum(psum, axis=0).reshape(1, Coutp)
    ss = jnp.sum(psumsq, axis=0).reshape(1, Coutp)
    mean = s * inv_n
    var = jnp.maximum(ss * inv_n - mean * mean, 0.0)    # biased variance
    inv_std = jax.lax.rsqrt(var + eps)
    scale = gamma_p * inv_std
    shift = beta_p - mean * scale

    # ---- pass 2: normalize + scale/shift + ReLU (lane-dense store) ----
    out2d = pl.pallas_call(
        _bn_relu_kernel,
        out_shape=jax.ShapeDtypeStruct((rows_p, Coutp), x_nchw.dtype),
        grid=(T,),
        in_specs=[
            pl.BlockSpec((TM, Coutp), lambda i: (i, 0)),
            pl.BlockSpec((1, Coutp), lambda i: (0, 0)),
            pl.BlockSpec((1, Coutp), lambda i: (0, 0)),
        ],
        out_specs=pl.BlockSpec((TM, Coutp), lambda i: (i, 0)),
        compiler_params=cparams,
    )(conv_out, scale, shift)

    out = out2d[:rows, :Cout].reshape(N, Ho, Wo, Cout)
    # TODO(synk): if the consumer accepts NHWC, this final transpose (a full
    # read+write of the output slab in XLA) can be skipped.
    return jnp.transpose(out, (0, 3, 1, 2))


def _reference_nchw(x_nchw, weight_oihw, gamma, beta, *, padding, eps=1e-5,
                    round_operands_to=None, round_conv_to=None):
    """Pure-JAX reference of the PyTorch module's training-mode forward.
    Optionally rounds the conv operands and/or the conv intermediate to a
    narrower dtype so the reference matches the kernel's arithmetic."""
    xf = x_nchw.astype(jnp.float32)
    wf = weight_oihw.astype(jnp.float32)
    if round_operands_to is not None:
        xf = xf.astype(round_operands_to).astype(jnp.float32)
        wf = wf.astype(round_operands_to).astype(jnp.float32)
    conv = jax.lax.conv_general_dilated(
        xf, wf, window_strides=(1, 1),
        padding=[(padding, padding), (padding, padding)],
        dimension_numbers=("NCHW", "OIHW", "NCHW"))
    mean = conv.mean(axis=(0, 2, 3), keepdims=True)
    var = ((conv - mean) ** 2).mean(axis=(0, 2, 3), keepdims=True)
    conv_used = conv
    if round_conv_to is not None:
        conv_used = conv.astype(round_conv_to).astype(jnp.float32)
    scale = gamma.reshape(1, -1, 1, 1) / jnp.sqrt(var + eps)
    shift = beta.reshape(1, -1, 1, 1) - mean * scale
    return jnp.maximum(conv_used * scale + shift, 0.0)


if __name__ == "__main__":
    # Shapes consistent with the module: N=2, Cin=4, H=W=16, Cout=8, k=3,
    # stride=1 -> padding=1, groups=1, bias=False.
    N, Cin, H, W = 2, 4, 16, 16
    Cout, Ksz = 8, 3
    padding = (Ksz - 1) // 2

    key = jax.random.PRNGKey(0)
    kx, kw = jax.random.split(key)
    x = jax.random.normal(kx, (N, Cin, H, W), dtype=jnp.float32)

    fan_in = Cin * Ksz * Ksz
    bound = 1.0 / np.sqrt(fan_in)
    weight = jax.random.uniform(kw, (Cout, Cin, Ksz, Ksz), dtype=jnp.float32,
                                minval=-bound, maxval=bound)
    gamma = jnp.ones((Cout,), dtype=jnp.float32)   # bn.weight default init
    beta = jnp.zeros((Cout,), dtype=jnp.float32)   # bn.bias default init

    # Small row tile so the test exercises the multi-tile (T > 1) path.
    out = conv_bn_relu(x, weight, gamma, beta, block_rows=128)
    out = jax.block_until_ready(out)
    assert out.shape == (N, Cout, H, W)

    # Matched-precision reference: bf16 MXU operands, f32 accumulation and
    # batch stats, conv intermediate rounded to bf16 before the BN epilogue.
    ref_matched = _reference_nchw(x, weight, gamma, beta, padding=padding,
                                  round_operands_to=jnp.bfloat16,
                                  round_conv_to=jnp.bfloat16)
    np.testing.assert_allclose(np.asarray(out), np.asarray(ref_matched),
                               rtol=1e-2, atol=2.5e-2)

    # Full-f32 reference -- differs only by bf16 rounding of the conv operands
    # and of the stored conv intermediate.
    ref_f32 = _reference_nchw(x, weight, gamma, beta, padding=padding)
    np.testing.assert_allclose(np.asarray(out), np.asarray(ref_f32),
                               rtol=6e-2, atol=6e-2)

    print("KERNEL_OK")
</pallas_src>

<mosaic_0001>
module attributes {stable_mosaic.version = 11 : i64} {
  func.func @_conv_stats_kernel(%arg0: i32, %arg1: memref<128x128xbf16, #tpu.memory_space<vmem>>, %arg2: memref<128x128xbf16, #tpu.memory_space<vmem>>, %arg3: memref<128x128xbf16, #tpu.memory_space<vmem>>, %arg4: memref<1x1x128xf32, #tpu.memory_space<vmem>>, %arg5: memref<1x1x128xf32, #tpu.memory_space<vmem>>) attributes {dimension_semantics = [#tpu.dimension_semantics<parallel>], iteration_bounds = array<i64: 4>, scalar_prefetch = 0 : i64, scratch_operands = 0 : i64, tpu.core_type = #tpu.core_type<tc>, window_params = [{transform_indices = @transform_0, window_bounds = array<i64: 128, 128>}, {pipeline_mode = #tpu.pipeline_mode<synchronous>, transform_indices = @transform_1, window_bounds = array<i64: 128, 128>}, {transform_indices = @transform_2, window_bounds = array<i64: 128, 128>}, {transform_indices = @transform_3, window_bounds = array<i64: 1, 1, 128>}, {transform_indices = @transform_4, window_bounds = array<i64: 1, 1, 128>}]} {
    %c0 = arith.constant 0 : index
    %c0_0 = arith.constant 0 : index
    %0 = vector.load %arg1[%c0, %c0_0] : memref<128x128xbf16, #tpu.memory_space<vmem>>, vector<128x128xbf16>
    %c0_1 = arith.constant 0 : index
    %c0_2 = arith.constant 0 : index
    %1 = vector.load %arg2[%c0_1, %c0_2] : memref<128x128xbf16, #tpu.memory_space<vmem>>, vector<128x128xbf16>
    %cst = arith.constant dense<0.000000e+00> : vector<128x128xf32>
    %2 = tpu.matmul %0, %1, %cst {dimension_numbers = #tpu.dot_dimension_numbers<[1], [0], [0], [1], [0, 0, 1, 1], [], []>} : vector<128x128xbf16>, vector<128x128xbf16>, vector<128x128xf32> -> vector<128x128xf32>
    %3 = arith.truncf %2 : vector<128x128xf32> to vector<128x128xbf16>
    %c0_3 = arith.constant 0 : index
    %c0_4 = arith.constant 0 : index
    %4 = vector.load %arg3[%c0_3, %c0_4] : memref<128x128xbf16, #tpu.memory_space<vmem>>, vector<128x128xbf16>
    tpu.vector_store %arg3[%c0_3, %c0_4], %3 {strides = array<i32>} : memref<128x128xbf16, #tpu.memory_space<vmem>>, vector<128x128xbf16>,
    %cst_5 = arith.constant dense<0.000000e+00> : vector<128xf32>
    %5 = vector.multi_reduction <add>, %2, %cst_5 [0] : vector<128x128xf32> to vector<128xf32>
    %6 = vector.shape_cast %5 : vector<128xf32> to vector<1x128xf32>
    %7 = vector.shape_cast %6 : vector<1x128xf32> to vector<1x1x128xf32>
    %c0_6 = arith.constant 0 : index
    %c0_7 = arith.constant 0 : index
    %c0_8 = arith.constant 0 : index
    %8 = vector.load %arg4[%c0_6, %c0_7, %c0_8] : memref<1x1x128xf32, #tpu.memory_space<vmem>>, vector<1x1x128xf32>
    tpu.vector_store %arg4[%c0_6, %c0_7, %c0_8], %7 {strides = array<i32>} : memref<1x1x128xf32, #tpu.memory_space<vmem>>, vector<1x1x128xf32>,
    %9 = arith.mulf %2, %2 : vector<128x128xf32>
    %cst_9 = arith.constant dense<0.000000e+00> : vector<128xf32>
    %10 = vector.multi_reduction <add>, %9, %cst_9 [0] : vector<128x128xf32> to vector<128xf32>
    %11 = vector.shape_cast %10 : vector<128xf32> to vector<1x128xf32>
    %12 = vector.shape_cast %11 : vector<1x128xf32> to vector<1x1x128xf32>
    %c0_10 = arith.constant 0 : index
    %c0_11 = arith.constant 0 : index
    %c0_12 = arith.constant 0 : index
    %13 = vector.load %arg5[%c0_10, %c0_11, %c0_12] : memref<1x1x128xf32, #tpu.memory_space<vmem>>, vector<1x1x128xf32>
    tpu.vector_store %arg5[%c0_10, %c0_11, %c0_12], %12 {strides = array<i32>} : memref<1x1x128xf32, #tpu.memory_space<vmem>>, vector<1x1x128xf32>,
    return
  }
  func.func @transform_0(%arg0: i32) -> (i32, i32) {
    %c0_i32 = arith.constant 0 : i32
    %c0_i32_0 = arith.constant 0 : i32
    return %arg0, %c0_i32 : i32, i32
  }
  func.func @transform_1(%arg0: i32) -> (i32, i32) {
    %c0_i32 = arith.constant 0 : i32
    %c0_i32_0 = arith.constant 0 : i32
    %c0_i32_1 = arith.constant 0 : i32
    return %c0_i32, %c0_i32_0 : i32, i32
  }
  func.func @transform_2(%arg0: i32) -> (i32, i32) {
    %c0_i32 = arith.constant 0 : i32
    %c0_i32_0 = arith.constant 0 : i32
    return %arg0, %c0_i32 : i32, i32
  }
  func.func @transform_3(%arg0: i32) -> (i32, i32, i32) {
    %c0_i32 = arith.constant 0 : i32
    %c0_i32_0 = arith.constant 0 : i32
    %c0_i32_1 = arith.constant 0 : i32
    return %arg0, %c0_i32, %c0_i32_0 : i32, i32, i32
  }
  func.func @transform_4(%arg0: i32) -> (i32, i32, i32) {
    %c0_i32 = arith.constant 0 : i32
    %c0_i32_0 = arith.constant 0 : i32
    %c0_i32_1 = arith.constant 0 : i32
    return %arg0, %c0_i32, %c0_i32_0 : i32, i32, i32
  }
}

module attributes {stable_mosaic.version = 11 : i64} {
  func.func @_bn_relu_kernel(%arg0: i32, %arg1: memref<128x128xbf16, #tpu.memory_space<vmem>>, %arg2: memref<1x128xf32, #tpu.memory_space<vmem>>, %arg3: memref<1x128xf32, #tpu.memory_space<vmem>>, %arg4: memref<128x128xf32, #tpu.memory_space<vmem>>) attributes {dimension_semantics = [#tpu.dimension_semantics<parallel>], iteration_bounds = array<i64: 4>, scalar_prefetch = 0 : i64, scratch_operands = 0 : i64, tpu.core_type = #tpu.core_type<tc>, window_params = [{transform_indices = @transform_0, window_bounds = array<i64: 128, 128>}, {pipeline_mode = #tpu.pipeline_mode<synchronous>, transform_indices = @transform_1, window_bounds = array<i64: 1, 128>}, {pipeline_mode = #tpu.pipeline_mode<synchronous>, transform_indices = @transform_2, window_bounds = array<i64: 1, 128>}, {transform_indices = @transform_3, window_bounds = array<i64: 128, 128>}]} {
    %c0 = arith.constant 0 : index
    %c0_0 = arith.constant 0 : index
    %0 = vector.load %arg1[%c0, %c0_0] : memref<128x128xbf16, #tpu.memory_space<vmem>>, vector<128x128xbf16>
    %1 = arith.extf %0 : vector<128x128xbf16> to vector<128x128xf32>
    %c0_1 = arith.constant 0 : index
    %c0_2 = arith.constant 0 : index
    %2 = vector.load %arg2[%c0_1, %c0_2] : memref<1x128xf32, #tpu.memory_space<vmem>>, vector<1x128xf32>
    %3 = vector.broadcast %2 : vector<1x128xf32> to vector<128x128xf32>
    %4 = arith.mulf %1, %3 : vector<128x128xf32>
    %c0_3 = arith.constant 0 : index
    %c0_4 = arith.constant 0 : index
    %5 = vector.load %arg3[%c0_3, %c0_4] : memref<1x128xf32, #tpu.memory_space<vmem>>, vector<1x128xf32>
    %6 = vector.broadcast %5 : vector<1x128xf32> to vector<128x128xf32>
    %7 = arith.addf %4, %6 : vector<128x128xf32>
    %cst = arith.constant 0.000000e+00 : f32
    %8 = vector.broadcast %cst : f32 to vector<128x128xf32>
    %9 = arith.maximumf %7, %8 : vector<128x128xf32>
    %c0_5 = arith.constant 0 : index
    %c0_6 = arith.constant 0 : index
    %10 = vector.load %arg4[%c0_5, %c0_6] : memref<128x128xf32, #tpu.memory_space<vmem>>, vector<128x128xf32>
    tpu.vector_store %arg4[%c0_5, %c0_6], %9 {strides = array<i32>} : memref<128x128xf32, #tpu.memory_space<vmem>>, vector<128x128xf32>,
    return
  }
  func.func @transform_0(%arg0: i32) -> (i32, i32) {
    %c0_i32 = arith.constant 0 : i32
    %c0_i32_0 = arith.constant 0 : i32
    return %arg0, %c0_i32 : i32, i32
  }
  func.func @transform_1(%arg0: i32) -> (i32, i32) {
    %c0_i32 = arith.constant 0 : i32
    %c0_i32_0 = arith.constant 0 : i32
    %c0_i32_1 = arith.constant 0 : i32
    return %c0_i32, %c0_i32_0 : i32, i32
  }
  func.func @transform_2(%arg0: i32) -> (i32, i32) {
    %c0_i32 = arith.constant 0 : i32
    %c0_i32_0 = arith.constant 0 : i32
    %c0_i32_1 = arith.constant 0 : i32
    return %c0_i32, %c0_i32_0 : i32, i32
  }
  func.func @transform_3(%arg0: i32) -> (i32, i32) {
    %c0_i32 = arith.constant 0 : i32
    %c0_i32_0 = arith.constant 0 : i32
    return %arg0, %c0_i32 : i32, i32
  }
}

</mosaic_0001>

<bundles_post_ra>
// kernel: conv_bn_relu.3
= control target key start
LH: loop header
LB: loop body
LE: loop exit
PB: predicated region body
PF: predicated region fallthrough
CT: control target
= control target key end

     0   :  { %s422_s12 = smov 0   ;;  %s513_s0 = inlined_call_operand.vmem [shape: bf16[512,128], index: 0, kind: input, shape index: {}]   ;;  %s514_s1 = inlined_call_operand.vmem [shape: f32[1,128], index: 1, kind: input, shape index: {}]   ;;  %s515_s2 = inlined_call_operand.vmem [shape: f32[1,128], index: 2, kind: input, shape index: {}]   ;;  %s516_s3 = inlined_call_operand.vmem [shape: f32[512,128], index: 3, kind: output, shape index: {}]  }
   0x1 LB: > { %s334_s13 = sadd.s32 4294967295, %s400_s12   ;;  %p338_p0 = scmp.ge.s32.totalorder %s400_s12, 1  ;;  %s400_s12 = sphi %s422_s12, %s13_s12  }
   0x2   : > { %p138_p1 = scmp.lt.s32.totalorder %s400_s12, 5 }
   0x4   : > { %p139_p2 = pnand %p338_p0, %p138_p1 }
   0x5   : > { %s339_s14 = sshll.u32 (!%p139_p2), %s334_s13, 4 }
   0x6   : > { %142 = sbr.rel (%p139_p2) target bundleno = 39 (0x27), region = 32  ;;  %p163_p3 = scmp.lt.s32.totalorder (!%p139_p2), %s339_s14, 63 }
   0xb   : > { %s518_s14 = smov (!%p163_p3, %s339_s14), 63  ;;  %v441_v0 = vld [vmem:[%s514_s1] ss:$0 sm:$0xff] }
   0xc   : > { %s340_s15 = sshll.u32 %s518_s14, 2  ;;  %v449_v5 = vld [vmem:[%s515_s2] ss:$0 sm:$0xff]  ;;  %s342_s23 = sshll.u32 %s518_s14, 3 }
   0xd   : > { %s436_s18 = scalar_lea.vmem %s513_s0, %s340_s15  ;;  %s468_s26 = scalar_lea.vmem %s516_s3, %s342_s23 }
   0xe   : > { %v346_v1 = vld [vmem:[%s436_s18] sm:$0xff]   ;;  %v377_v2 = vld [vmem:[%s436_s18 + $0x8] sm:$0xff]   ;;  %v378_v3 = vld [vmem:[%s436_s18 + $0x10] sm:$0xff]  }
   0xf   : > { %v347_v4 = vunpack.c.l.bf16 %v346_v1  ;;  %v348_v6 = vunpack.c.h.bf16 %v346_v1  ;;  %v351_v7 = vunpack.c.l.bf16 %v377_v2  ;;  %v352_v8 = vunpack.c.h.bf16 %v377_v2  ;;  %v379_v9 = vld [vmem:[%s436_s18 + $0x18] sm:$0xff]   ;;  %v380_v30 = vld [vmem:[%s436_s18 + $0x20] sm:$0xff]   ;;  %v381_v31 = vld [vmem:[%s436_s18 + $0x28] sm:$0xff]  }
  0x10   : > { %v355_v10 = vunpack.c.l.bf16 %v378_v3  ;;  %v356_v11 = vunpack.c.h.bf16 %v378_v3  ;;  %v359_v12 = vunpack.c.l.bf16 %v379_v9  ;;  %v360_v13 = vunpack.c.h.bf16 %v379_v9  ;;  %v382_v36 = vld [vmem:[%s436_s18 + $0x30] sm:$0xff]   ;;  %v383_v37 = vld [vmem:[%s436_s18 + $0x38] sm:$0xff]  }
  0x11   : > { %v210_v14 = vmul.f32 %v441_v0, %v347_v4  ;;  %v211_v15 = vmul.f32 %v441_v0, %v348_v6  ;;  %v212_v16 = vmul.f32 %v441_v0, %v351_v7  ;;  %v213_v17 = vmul.f32 %v441_v0, %v352_v8 }
  0x12   : > { %v214_v18 = vmul.f32 %v441_v0, %v355_v10  ;;  %v215_v19 = vmul.f32 %v441_v0, %v356_v11  ;;  %v216_v20 = vmul.f32 %v441_v0, %v359_v12  ;;  %v217_v21 = vmul.f32 %v441_v0, %v360_v13 }
  0x13   : > { %v230_v22 = vadd.f32 %v449_v5, %v210_v14  ;;  %v231_v23 = vadd.f32 %v449_v5, %v211_v15  ;;  %v232_v24 = vadd.f32 %v449_v5, %v212_v16  ;;  %v233_v25 = vadd.f32 %v449_v5, %v213_v17 }
  0x14   : > { %v234_v26 = vadd.f32 %v449_v5, %v214_v18  ;;  %v235_v27 = vadd.f32 %v449_v5, %v215_v19  ;;  %v236_v28 = vadd.f32 %v449_v5, %v216_v20  ;;  %v237_v29 = vadd.f32 %v449_v5, %v217_v21 }
  0x15   : > { %v246_v32 = vmax.f32 %v230_v22, 0.0  ;;  %v247_v33 = vmax.f32 %v231_v23, 0.0  ;;  %v248_v34 = vmax.f32 %v232_v24, 0.0  ;;  %v249_v35 = vmax.f32 %v233_v25, 0.0 }
  0x16   : > { %v250_v38 = vmax.f32 %v234_v26, 0.0  ;;  %v251_v39 = vmax.f32 %v235_v27, 0.0  ;;  %v252_v40 = vmax.f32 %v236_v28, 0.0  ;;  %v253_v41 = vmax.f32 %v237_v29, 0.0 }
  0x17   : > { %262 = vst [vmem:[%s468_s26] sm:$0xff] %v246_v32  ;;  %v363_v42 = vunpack.c.l.bf16 %v380_v30  ;;  %v364_v43 = vunpack.c.h.bf16 %v380_v30  ;;  %v367_v44 = vunpack.c.l.bf16 %v381_v31  ;;  %v368_v45 = vunpack.c.h.bf16 %v381_v31 }
  0x18   : > { %263 = vst [vmem:[%s468_s26 + $0x8] sm:$0xff] %v247_v33  ;;  %v371_v46 = vunpack.c.l.bf16 %v382_v36  ;;  %v372_v47 = vunpack.c.h.bf16 %v382_v36  ;;  %v375_v48 = vunpack.c.l.bf16 %v383_v37  ;;  %v376_v49 = vunpack.c.h.bf16 %v383_v37 }
  0x19   : > { %264 = vst [vmem:[%s468_s26 + $0x10] sm:$0xff] %v248_v34  ;;  %v218_v50 = vmul.f32 %v441_v0, %v363_v42  ;;  %v219_v51 = vmul.f32 %v441_v0, %v364_v43  ;;  %v220_v52 = vmul.f32 %v441_v0, %v367_v44  ;;  %v221_v53 = vmul.f32 %v441_v0, %v368_v45 }
  0x1a   : > { %265 = vst [vmem:[%s468_s26 + $0x18] sm:$0xff] %v249_v35  ;;  %v222_v54 = vmul.f32 %v441_v0, %v371_v46  ;;  %v223_v55 = vmul.f32 %v441_v0, %v372_v47  ;;  %v224_v56 = vmul.f32 %v441_v0, %v375_v48  ;;  %v225_v57 = vmul.f32 %v441_v0, %v376_v49 }
  0x1b   : > { %266 = vst [vmem:[%s468_s26 + $0x20] sm:$0xff] %v250_v38  ;;  %v238_v58 = vadd.f32 %v449_v5, %v218_v50  ;;  %v239_v59 = vadd.f32 %v449_v5, %v219_v51  ;;  %v240_v60 = vadd.f32 %v449_v5, %v220_v52  ;;  %v241_v61 = vadd.f32 %v449_v5, %v221_v53 }
  0x1c   : > { %267 = vst [vmem:[%s468_s26 + $0x28] sm:$0xff] %v251_v39  ;;  %v242_v62 = vadd.f32 %v449_v5, %v222_v54  ;;  %v243_v63 = vadd.f32 %v449_v5, %v223_v55  ;;  %v244_v3 = vadd.f32 %v449_v5, %v224_v56  ;;  %v245_v6 = vadd.f32 %v449_v5, %v225_v57 }
  0x1d   : > { %268 = vst [vmem:[%s468_s26 + $0x30] sm:$0xff] %v252_v40  ;;  %v254_v0 = vmax.f32 %v238_v58, 0.0  ;;  %v255_v1 = vmax.f32 %v239_v59, 0.0  ;;  %v256_v2 = vmax.f32 %v240_v60, 0.0  ;;  %v257_v4 = vmax.f32 %v241_v61, 0.0 }
  0x1e   : > { %269 = vst [vmem:[%s468_s26 + $0x38] sm:$0xff] %v253_v41  ;;  %v258_v7 = vmax.f32 %v242_v62, 0.0  ;;  %v259_v8 = vmax.f32 %v243_v63, 0.0  ;;  %v260_v9 = vmax.f32 %v244_v3, 0.0  ;;  %v261_v10 = vmax.f32 %v245_v6, 0.0 }
  0x1f   : > { %270 = vst [vmem:[%s468_s26 + $0x40] sm:$0xff] %v254_v0 }
  0x20   : > { %271 = vst [vmem:[%s468_s26 + $0x48] sm:$0xff] %v255_v1 }
  0x21   : > { %272 = vst [vmem:[%s468_s26 + $0x50] sm:$0xff] %v256_v2 }
  0x22   : > { %273 = vst [vmem:[%s468_s26 + $0x58] sm:$0xff] %v257_v4 }
  0x23   : > { %274 = vst [vmem:[%s468_s26 + $0x60] sm:$0xff] %v258_v7 }
  0x24   : > { %275 = vst [vmem:[%s468_s26 + $0x68] sm:$0xff] %v259_v8 }
  0x25   : > { %276 = vst [vmem:[%s468_s26 + $0x70] sm:$0xff] %v260_v9 }
  0x26   : > { %277 = vst [vmem:[%s468_s26 + $0x78] sm:$0xff] %v261_v10 }
  0x27 PF: > { %s13_s12 = sadd.s32 1, %s400_s12  }
  0x28   : > { %p10_p4 = scmp.ge.s32.totalorder %s13_s12, 6  }
  0x2a   :  { %12 = sbr.rel (!%p10_p4) target bundleno = 1 (0x1), region = 62 }

// kernel: conv_bn_relu.2
= control target key start
LH: loop header
LB: loop body
LE: loop exit
PB: predicated region body
PF: predicated region fallthrough
CT: control target
= control target key end

     0   :  { %s796_s15 = smov 0   ;;  %s871_s0 = inlined_call_operand.vmem [shape: bf16[512,128], index: 0, kind: input, shape index: {}]   ;;  %s872_s1 = inlined_call_operand.vmem [shape: bf16[128,128], index: 1, kind: input, shape index: {}]   ;;  %s873_s2 = inlined_call_operand.vmem [shape: bf16[512,128], index: 2, kind: output, shape index: {0}]   ;;  %s874_s3 = inlined_call_operand.vmem [shape: f32[4,1,128], index: 3, kind: output, shape index: {1}]   ;;  %s875_s4 = inlined_call_operand.vmem [shape: f32[4,1,128], index: 4, kind: output, shape index: {2}]  }
   0x1 LB: > { %s802_s16 = sadd.s32 4294967295, %s769_s15   ;;  %p597_p0 = scmp.ge.s32.totalorder %s769_s15, 1  ;;  %s769_s15 = sphi %s796_s15, %s15_s15  }
   0x2   : > { %p168_p1 = scmp.lt.s32.totalorder %s769_s15, 5 }
   0x4   : > { %p169_p2 = pnand %p597_p0, %p168_p1 }
   0x5   : > { %s598_s25 = sshll.u32 (!%p169_p2), %s802_s16, 4  ;;  %p212_p4 = scmp.lt.s32.totalorder (!%p169_p2), %s802_s16, 3 }
   0x6   : > { %172 = sbr.rel (%p169_p2) target bundleno = 234 (0xea), region = 28  ;;  %p201_p3 = scmp.lt.s32.totalorder (!%p169_p2), %s598_s25, 63 }
   0xb   : > { %v683_v0 = vld [vmem:[%s872_s1 + $0x38] sm:$0xff]  ;;  %v682_v1 = vld [vmem:[%s872_s1 + $0x30] sm:$0xff]  ;;  %v681_v2 = vld [vmem:[%s872_s1 + $0x28] sm:$0xff]  ;;  %s877_s25 = smov (!%p201_p3, %s598_s25), 63  ;;  %s879_s16 = smov (!%p212_p4, %s802_s16), 3 }
   0xc   : > { %346 = vmatpush.bf16.msra.mxu0 %v683_v0  ;;  %731 = vmatpush.bf16.msra.mxu1 %v683_v0  ;;  %v680_v3 = vld [vmem:[%s872_s1 + $0x20] sm:$0xff]  ;;  %v679_v4 = vld [vmem:[%s872_s1 + $0x18] sm:$0xff]  ;;  %v678_v5 = vld [vmem:[%s872_s1 + $0x10] sm:$0xff]  ;;  %s599_s6 = sshll.u32 %s877_s25, 2  ;;  %s214_s19 = scalar_lea.vmem %s874_s3, %s879_s16 }
   0xd   : > { %732 = vmatpush.bf16.msra.mxu2 %v683_v0  ;;  %733 = vmatpush.bf16.msra.mxu3 %v683_v0  ;;  %v677_v6 = vld [vmem:[%s872_s1 + $0x8] sm:$0xff]  ;;  %v676_v7 = vld [vmem:[%s872_s1] sm:$0xff]  ;;  %s204_s11 = scalar_lea.vmem %s871_s0, %s599_s6  ;;  %s846_s14 = scalar_lea.vmem %s873_s2, %s599_s6 }
   0xe   : > { %v668_v8 = vld [vmem:[%s204_s11] sm:$0xff]  ;;  %v670_v9 = vld [vmem:[%s204_s11 + $0x10] sm:$0xff]  ;;  %v669_v12 = vld [vmem:[%s204_s11 + $0x8] sm:$0xff]  ;;  %s217_s22 = scalar_lea.vmem %s875_s4, %s879_s16 }
   0xf   : > { %v672_v10 = vld [vmem:[%s204_s11 + $0x20] sm:$0xff]  ;;  %v674_v11 = vld [vmem:[%s204_s11 + $0x30] sm:$0xff]  ;;  %v671_v13 = vld [vmem:[%s204_s11 + $0x18] sm:$0xff] }
  0x10   : > { %347 = vmatpush.bf16.msra.mxu0 %v682_v1  ;;  %734 = vmatpush.bf16.msra.mxu1 %v682_v1  ;;  %v673_v14 = vld [vmem:[%s204_s11 + $0x28] sm:$0xff]  ;;  %v675_v15 = vld [vmem:[%s204_s11 + $0x38] sm:$0xff] }
  0x11   : > { %735 = vmatpush.bf16.msra.mxu2 %v682_v1  ;;  %736 = vmatpush.bf16.msra.mxu3 %v682_v1 }
  0x14   : > { %348 = vmatpush.bf16.msra.mxu0 %v681_v2  ;;  %737 = vmatpush.bf16.msra.mxu1 %v681_v2 }
  0x15   : > { %738 = vmatpush.bf16.msra.mxu2 %v681_v2  ;;  %739 = vmatpush.bf16.msra.mxu3 %v681_v2 }
  0x18   : > { %349 = vmatpush.bf16.msra.mxu0 %v680_v3  ;;  %740 = vmatpush.bf16.msra.mxu1 %v680_v3 }
  0x19   : > { %741 = vmatpush.bf16.msra.mxu2 %v680_v3  ;;  %742 = vmatpush.bf16.msra.mxu3 %v680_v3 }
  0x1c   : > { %350 = vmatpush.bf16.msra.mxu0 %v679_v4  ;;  %743 = vmatpush.bf16.msra.mxu1 %v679_v4 }
  0x1d   : > { %744 = vmatpush.bf16.msra.mxu2 %v679_v4  ;;  %745 = vmatpush.bf16.msra.mxu3 %v679_v4 }
  0x20   : > { %351 = vmatpush.bf16.msra.mxu0 %v678_v5  ;;  %746 = vmatpush.bf16.msra.mxu1 %v678_v5 }
  0x21   : > { %747 = vmatpush.bf16.msra.mxu2 %v678_v5  ;;  %748 = vmatpush.bf16.msra.mxu3 %v678_v5 }
  0x24   : > { %352 = vmatpush.bf16.msra.mxu0 %v677_v6  ;;  %749 = vmatpush.bf16.msra.mxu1 %v677_v6 }
  0x25   : > { %750 = vmatpush.bf16.msra.mxu2 %v677_v6  ;;  %751 = vmatpush.bf16.msra.mxu3 %v677_v6 }
  0x28   : > { %353 = vmatpush.bf16.msra.mxu0 %v676_v7  ;;  %752 = vmatpush.bf16.msra.mxu1 %v676_v7 }
  0x29   : > { %753 = vmatpush.bf16.msra.mxu2 %v676_v7  ;;  %754 = vmatpush.bf16.msra.mxu3 %v676_v7 }
  0x2b   : > { %354 = vmatmul.bf16.vlgmr.msra.gmra.mxu0 %v668_v8  ;;  %364 = vmatmul.bf16.vlgmr.msra.gmra.mxu1 %v670_v9 }
  0x2c   : > { %374 = vmatmul.bf16.vlgmr.msra.gmra.mxu2 %v672_v10  ;;  %384 = vmatmul.bf16.vlgmr.msra.gmra.mxu3 %v674_v11 }
  0x3b   : > { %359 = vmatmul.bf16.gmra.mxu0 %v669_v12  ;;  %369 = vmatmul.bf16.gmra.mxu1 %v671_v13 }
  0x3c   : > { %379 = vmatmul.bf16.gmra.mxu2 %v673_v14  ;;  %389 = vmatmul.bf16.gmra.mxu3 %v675_v15 }
  0xa8   : > { %v355_v16 = vpop.f32.mrf.mxu0  ;;  %v365_v17 = vpop.f32.mrf.mxu1 }
  0xa9   : > { %v449_v31 = vmul.f32 %v355_v16, %v355_v16  ;;  %v453_v45 = vmul.f32 %v365_v17, %v365_v17 }
  0xaf   : > { %v375_v18 = vpop.f32.mrf.mxu2  ;;  %v839_v19 = vpop.f32.mrf.mxu3 }
  0xb0   : > { %v357_v20 = vpop.f32.mrf.mxu0  ;;  %v367_v21 = vpop.f32.mrf.mxu1  ;;  %v457_v61 = vmul.f32 %v375_v18, %v375_v18  ;;  %v461_v9 = vmul.f32 %v839_v19, %v839_v19 }
  0xb1   : > { %v687_v22 = vpack.c.bf16 %v357_v20, %v355_v16  ;;  %v697_v23 = vpack.c.bf16 %v367_v21, %v365_v17  ;;  %v450_v30 = vmul.f32 %v357_v20, %v357_v20  ;;  %v427_v33 = vadd.f32 %v357_v20, %v355_v16 }
  0xb2   : > { %v454_v48 = vmul.f32 %v367_v21, %v367_v21 }
  0xb3   : > { %688 = vst [vmem:[%s846_s14] sm:$0xff] %v687_v22   ;;  %v465_v34 = vadd.f32 %v450_v30, %v449_v31 }
  0xb4   : > { %725 = vst [vmem:[%s846_s14 + $0x10] sm:$0xff] %v697_v23  }
  0xb7   : > { %v377_v24 = vpop.f32.mrf.mxu2  ;;  %v387_v25 = vpop.f32.mrf.mxu3 }
  0xb8   : > { %v360_v26 = vpop.f32.mrf.mxu0  ;;  %v370_v27 = vpop.f32.mrf.mxu1  ;;  %v707_v28 = vpack.c.bf16 %v377_v24, %v375_v18  ;;  %v717_v29 = vpack.c.bf16 %v387_v25, %v839_v19  ;;  %v458_v0 = vmul.f32 %v377_v24, %v377_v24  ;;  %v462_v12 = vmul.f32 %v387_v25, %v387_v25 }
  0xb9   : > { %v451_v32 = vmul.f32 %v360_v26, %v360_v26  ;;  %v428_v35 = vadd.f32 %v427_v33, %v360_v26  ;;  %v455_v51 = vmul.f32 %v370_v27, %v370_v27 }
  0xba   : > { %727 = vst [vmem:[%s846_s14 + $0x20] sm:$0xff] %v707_v28  }
  0xbb   : > { %729 = vst [vmem:[%s846_s14 + $0x30] sm:$0xff] %v717_v29   ;;  %v466_v38 = vadd.f32 %v465_v34, %v451_v32 }
  0xbf   : > { %v380_v36 = vpop.f32.mrf.mxu2  ;;  %v390_v37 = vpop.f32.mrf.mxu3 }
  0xc0   : > { %v362_v39 = vpop.f32.mrf.mxu0  ;;  %v372_v40 = vpop.f32.mrf.mxu1  ;;  %v459_v4 = vmul.f32 %v380_v36, %v380_v36  ;;  %v463_v16 = vmul.f32 %v390_v37, %v390_v37 }
  0xc1   : > { %v692_v41 = vpack.c.bf16 %v362_v39, %v360_v26  ;;  %v429_v42 = vadd.f32 %v428_v35, %v362_v39  ;;  %v452_v43 = vmul.f32 %v362_v39, %v362_v39  ;;  %v702_v44 = vpack.c.bf16 %v372_v40, %v370_v27 }
  0xc2   : > { %v456_v59 = vmul.f32 %v372_v40, %v372_v40 }
  0xc3   : > { %724 = vst [vmem:[%s846_s14 + $0x8] sm:$0xff] %v692_v41   ;;  %v430_v46 = vadd.f32 %v429_v42, %v365_v17  ;;  %v467_v47 = vadd.f32 %v466_v38, %v452_v43 }
  0xc4   : > { %726 = vst [vmem:[%s846_s14 + $0x18] sm:$0xff] %v702_v44  }
  0xc5   : > { %v468_v49 = vadd.f32 %v467_v47, %v453_v45  ;;  %v431_v50 = vadd.f32 %v430_v46, %v367_v21 }
  0xc7   : > { %v432_v52 = vadd.f32 %v431_v50, %v370_v27  ;;  %v469_v53 = vadd.f32 %v468_v49, %v454_v48  ;;  %v382_v54 = vpop.f32.mrf.mxu2  ;;  %v392_v55 = vpop.f32.mrf.mxu3 }
  0xc8   : > { %v712_v56 = vpack.c.bf16 %v382_v54, %v380_v36  ;;  %v722_v57 = vpack.c.bf16 %v392_v55, %v390_v37  ;;  %v460_v8 = vmul.f32 %v382_v54, %v382_v54  ;;  %v464_v21 = vmul.f32 %v392_v55, %v392_v55 }
  0xc9   : > { %v433_v58 = vadd.f32 %v432_v52, %v372_v40  ;;  %v470_v60 = vadd.f32 %v469_v53, %v455_v51 }
  0xca   : > { %728 = vst [vmem:[%s846_s14 + $0x28] sm:$0xff] %v712_v56  }
  0xcb   : > { %v434_v62 = vadd.f32 %v433_v58, %v375_v18  ;;  %v471_v63 = vadd.f32 %v470_v60, %v456_v59  ;;  %730 = vst [vmem:[%s846_s14 + $0x38] sm:$0xff] %v722_v57  }
  0xcd   : > { %v472_v1 = vadd.f32 %v471_v63, %v457_v61  ;;  %v435_v2 = vadd.f32 %v434_v62, %v377_v24 }
  0xcf   : > { %v436_v3 = vadd.f32 %v435_v2, %v380_v36  ;;  %v473_v5 = vadd.f32 %v472_v1, %v458_v0 }
  0xd1   : > { %v474_v6 = vadd.f32 %v473_v5, %v459_v4  ;;  %v437_v7 = vadd.f32 %v436_v3, %v382_v54 }
  0xd3   : > { %v438_v10 = vadd.f32 %v437_v7, %v839_v19  ;;  %v475_v11 = vadd.f32 %v474_v6, %v460_v8 }
  0xd5   : > { %v476_v13 = vadd.f32 %v475_v11, %v461_v9  ;;  %v439_v14 = vadd.f32 %v438_v10, %v387_v25 }
  0xd7   : > { %v440_v15 = vadd.f32 %v439_v14, %v390_v37  ;;  %v477_v17 = vadd.f32 %v476_v13, %v462_v12 }
  0xd9   : > { %v478_v18 = vadd.f32 %v477_v17, %v463_v16  ;;  %v441_v20 = vadd.f32 %v440_v15, %v392_v55 }
  0xdb   : > { %v442_v22 = vrot.slane %v441_v20, 4  ;;  %v479_v23 = vadd.f32 %v478_v18, %v464_v21 }
  0xdd   : > { %v443_v24 = vadd.f32 %v442_v22, %v441_v20  ;;  %v480_v26 = vrot.slane %v479_v23, 4 }
  0xdf   : > { %v444_v27 = vrot.slane %v443_v24, 2  ;;  %v481_v28 = vadd.f32 %v480_v26, %v479_v23 }
  0xe1   : > { %v445_v19 = vadd.f32 %v444_v27, %v443_v24  ;;  %v482_v29 = vrot.slane %v481_v28, 2 }
  0xe3   : > { %v446_v30 = vrot.slane %v445_v19, 1  ;;  %v483_v31 = vadd.f32 %v482_v29, %v481_v28 }
  0xe5   : > { %v447_v25 = vadd.f32 %v446_v30, %v445_v19  ;;  %v484_v32 = vrot.slane %v483_v31, 1 }
  0xe7   : > { %448 = vst [vmem:[%s214_s19] sm:$0x1] %v447_v25  ;;  %v485_v33 = vadd.f32 %v484_v32, %v483_v31 }
  0xe9   : > { %486 = vst [vmem:[%s217_s22] sm:$0x1] %v485_v33 }
  0xea PF: > { %s15_s15 = sadd.s32 1, %s769_s15  }
  0xeb   : > { %p12_p5 = scmp.ge.s32.totalorder %s15_s15, 6  }
  0xed   :  { %14 = sbr.rel (!%p12_p5) target bundleno = 1 (0x1), region = 82 }

</bundles_post_ra>
